<compile_context>
chip_gen: v7x
topology: tpu7x:2x2x1
jax: 0.10.0
libtpu: 0.0.40
codegen_flags: <defaults>
</compile_context>

<pallas_src>
import math
import functools

import jax
import jax.numpy as jnp
from jax import lax
from jax.experimental import pallas as pl
from jax.experimental.pallas import tpu as pltpu


_NEG_BIG = -1e30      # finite mask bias: avoids exp(-inf - -inf) NaN


# ---------------------------------------------------------------------------
# Sizing helpers
# ---------------------------------------------------------------------------
def _round_up(x, m):
    return (x + m - 1) // m * m


def _vmem_limit_bytes():
    """Per-generation scoped-VMEM budget: ~3/4 of physical VMEM
    (v5e/v6e: 128 MiB -> 96 MiB, v7x: 64 MiB -> 48 MiB), capped at 100 MiB."""
    try:
        cap = int(pltpu.get_tpu_info().vmem_capacity_bytes)
    except Exception:
        cap = 64 * 1024 * 1024
    return int(min(cap * 3 // 4, 100 * 1024 * 1024))


def _largest_divisor_tile(dim, candidates):
    for c in candidates:
        if dim >= c and dim % c == 0:
            return c
    return dim


def _flash_tiles(S, Htot, itemsize, vmem_limit):
    """Pick (S_pad, tq, tk): prefer large tiles (cuts K/V re-reads), pad S to a
    friendly multiple instead of falling back to tiny tiles, respect the
    per-generation VMEM budget."""
    def fits(t):
        blocks = 2 * 4 * t * Htot * itemsize            # q/k/v/out, double-buffered
        scratch = t * Htot * 4 + 2 * t * 128 * 4        # f32 acc + per-head stats
        return blocks + scratch <= int(0.7 * vmem_limit)

    for t in (512, 256, 128):
        pad = _round_up(S, t) - S
        if S >= t // 2 and pad <= max(S // 4, 8) and fits(t):
            return _round_up(S, t), t, t
    # Small / ragged sequences: single padded tile (multiple of 8 sublanes).
    s_pad = _round_up(max(S, 8), 8)
    return s_pad, s_pad, s_pad
    # TODO(synk): for very large H*da on v7x, add a head-group grid axis so the
    #             flash blocks stop scaling with the full model width.


def _proj_tiles(S_pad, Din, Dout, itemsize, vmem_limit, n_mats=1):
    """Tiles for the projection matmuls: (seq tile, out-feature tile, in-feature
    reduction tile).  Shrink the seq tile if the block set exceeds budget."""
    ts = _largest_divisor_tile(S_pad, (512, 256, 128, 64, 32, 16, 8))
    tn = _largest_divisor_tile(Dout, (512, 256, 128))
    tkp = _largest_divisor_tile(Din, (512, 256, 128))

    def need(ts_):
        return (2 * (ts_ * tkp + n_mats * (tkp * tn + ts_ * tn)) * itemsize
                + n_mats * ts_ * tn * 4)

    while need(ts) > int(0.7 * vmem_limit) and ts % 16 == 0 and ts > 8:
        ts //= 2
    return ts, tn, tkp


# ---------------------------------------------------------------------------
# Kernel 1: fused QKV projection — one x read feeds three MXU matmuls, three
# lane-dense (B, S, H*da) outputs.  Grid: (B, seq tiles, out tiles, K tiles).
# ---------------------------------------------------------------------------
def _qkv_proj_kernel(x_ref, wq_ref, wk_ref, wv_ref, q_ref, k_ref, v_ref,
                     qacc, kacc, vacc):
    kp = pl.program_id(3)

    @pl.when(kp == 0)
    def _():
        qacc[...] = jnp.zeros_like(qacc)
        kacc[...] = jnp.zeros_like(kacc)
        vacc[...] = jnp.zeros_like(vacc)

    x = x_ref[0]                                         # (ts, tkp)
    qacc[...] += jnp.dot(x, wq_ref[...], preferred_element_type=jnp.float32)
    kacc[...] += jnp.dot(x, wk_ref[...], preferred_element_type=jnp.float32)
    vacc[...] += jnp.dot(x, wv_ref[...], preferred_element_type=jnp.float32)

    @pl.when(kp == pl.num_programs(3) - 1)
    def _():
        q_ref[0] = qacc[...].astype(q_ref.dtype)
        k_ref[0] = kacc[...].astype(k_ref.dtype)
        v_ref[0] = vacc[...].astype(v_ref.dtype)


# ---------------------------------------------------------------------------
# Kernel 3: tiled output projection  attn @ Wo^T  with f32 accumulator.
# ---------------------------------------------------------------------------
def _proj_kernel(x_ref, w_ref, o_ref, acc_ref):
    kp = pl.program_id(3)

    @pl.when(kp == 0)
    def _():
        acc_ref[...] = jnp.zeros_like(acc_ref)

    acc_ref[...] += jnp.dot(x_ref[0], w_ref[...],
                            preferred_element_type=jnp.float32)

    @pl.when(kp == pl.num_programs(3) - 1)
    def _():
        o_ref[0] = acc_ref[...].astype(o_ref.dtype)


# ---------------------------------------------------------------------------
# Kernel 2: causal flash attention, flat-head (lane-dense) layout.
# Blocks: q (1, tq, H*da), k/v (1, tk, H*da), out (1, tq, H*da).
# ---------------------------------------------------------------------------
def _flash_attn_kernel(q_ref, k_ref, v_ref, o_ref, m_sc, l_sc, acc_sc,
                       *, tq, tk, n_heads, d_attn):
    qi = pl.program_id(1)
    ki = pl.program_id(2)
    q_start = qi * tq
    k_start = ki * tk

    @pl.when(ki == 0)
    def _():
        m_sc[...] = jnp.full_like(m_sc, _NEG_BIG)
        l_sc[...] = jnp.zeros_like(l_sc)
        acc_sc[...] = jnp.zeros_like(acc_sc)

    needed = k_start <= q_start + (tq - 1)       # tile has >= 1 unmasked entry
    on_diag = k_start + (tk - 1) > q_start       # tile straddles the diagonal

    def make_body(masked):
        def body():
            if masked:
                row = q_start + lax.broadcasted_iota(jnp.int32, (tq, tk), 0)
                col = k_start + lax.broadcasted_iota(jnp.int32, (tq, tk), 1)
                keep = col <= row
            for h in range(n_heads):
                hs = pl.ds(h * d_attn, d_attn)
                qh = q_ref[0, :, hs]                       # (tq, da); 1/sqrt(da) in W_q
                kh = k_ref[0, :, hs]                       # (tk, da)
                vh = v_ref[0, :, hs]                       # (tk, da)
                s = lax.dot_general(qh, kh, (((1,), (1,)), ((), ())),
                                    preferred_element_type=jnp.float32)  # (tq, tk)
                if masked:
                    s = jnp.where(keep, s, _NEG_BIG)
                m_prev = m_sc[:, h:h + 1]                                # (tq, 1)
                m_new = jnp.maximum(m_prev, s.max(axis=-1, keepdims=True))
                alpha = jnp.exp(m_prev - m_new)
                p = jnp.exp(s - m_new)
                l_sc[:, h:h + 1] = alpha * l_sc[:, h:h + 1] + p.sum(axis=-1,
                                                                    keepdims=True)
                acc_sc[:, hs] = alpha * acc_sc[:, hs] + jnp.dot(
                    p.astype(vh.dtype), vh, preferred_element_type=jnp.float32)
                m_sc[:, h:h + 1] = m_new
        return body

    # Fast path (no iota / select) on interior tiles; mask only on the diagonal.
    pl.when(jnp.logical_and(needed, jnp.logical_not(on_diag)))(make_body(False))
    pl.when(jnp.logical_and(needed, on_diag))(make_body(True))

    @pl.when(ki == pl.num_programs(2) - 1)
    def _():
        for h in range(n_heads):
            hs = pl.ds(h * d_attn, d_attn)
            # exact divide: runs once per q tile, keeps f32 fidelity
            o_ref[0, :, hs] = (acc_sc[:, hs] / l_sc[:, h:h + 1]).astype(o_ref.dtype)


# ---------------------------------------------------------------------------
# Parameter prep (hoisted out of the forward): transpose, fold scale, cast.
# ---------------------------------------------------------------------------
def prepare_attention_params(wq, wk, wv, wo, *, n_heads, dtype=None):
    Htot = wq.shape[0]
    d_attn = Htot // n_heads
    scale = 1.0 / math.sqrt(d_attn)
    if dtype is None:
        dtype = wq.dtype
    wq_t = (wq.T.astype(jnp.float32) * scale).astype(dtype)  # fold scale in f32
    wk_t = wk.T.astype(dtype)
    wv_t = wv.T.astype(dtype)
    wo_t = wo.T.astype(dtype)
    return wq_t, wk_t, wv_t, wo_t


# ---------------------------------------------------------------------------
# Wrapper: full forward pass (eval mode, softmax path, self-attention)
# ---------------------------------------------------------------------------
def attention_forward(x, wq_t, wk_t, wv_t, wo_t, *, n_heads):
    """x: (B, S, D).  wq_t/wk_t/wv_t: (D, H*da) with scale folded into wq_t.
    wo_t: (H*da, D_out)."""
    B, S, D = x.shape
    Htot = wq_t.shape[1]
    d_attn = Htot // n_heads
    D_out = wo_t.shape[1]
    dtype = wq_t.dtype
    x = x.astype(dtype)

    vmem_limit = _vmem_limit_bytes()
    itemsize = jnp.dtype(dtype).itemsize

    S_pad, tq, tk = _flash_tiles(S, Htot, itemsize, vmem_limit)
    if S_pad != S:
        x = jnp.pad(x, ((0, 0), (0, S_pad - S), (0, 0)))

    # ---- fused QKV projection: three lane-dense (B, S_pad, Htot) outputs ----
    ts, tn, tkp = _proj_tiles(S_pad, D, Htot, itemsize, vmem_limit, n_mats=3)
    q, k, v = pl.pallas_call(
        _qkv_proj_kernel,
        out_shape=[jax.ShapeDtypeStruct((B, S_pad, Htot), dtype)] * 3,
        grid=(B, S_pad // ts, Htot // tn, D // tkp),
        in_specs=[
            pl.BlockSpec((1, ts, tkp), lambda b, si, ni, kp: (b, si, kp)),
            pl.BlockSpec((tkp, tn), lambda b, si, ni, kp: (kp, ni)),
            pl.BlockSpec((tkp, tn), lambda b, si, ni, kp: (kp, ni)),
            pl.BlockSpec((tkp, tn), lambda b, si, ni, kp: (kp, ni)),
        ],
        out_specs=[pl.BlockSpec((1, ts, tn),
                                lambda b, si, ni, kp: (b, si, ni))] * 3,
        scratch_shapes=[pltpu.VMEM((ts, tn), jnp.float32)] * 3,
        compiler_params=pltpu.CompilerParams(
            dimension_semantics=("parallel", "parallel", "parallel", "arbitrary"),
            vmem_limit_bytes=vmem_limit),
    )(x, wq_t, wk_t, wv_t)

    # ---- causal flash attention (flat heads, lane-dense output) ----
    nq, nk = S_pad // tq, S_pad // tk
    kernel = functools.partial(_flash_attn_kernel, tq=tq, tk=tk,
                               n_heads=n_heads, d_attn=d_attn)

    def kv_index(b, qi, ki):
        # clamp so fully-masked causal tiles reuse the resident block (no DMA)
        last = (qi * tq + (tq - 1)) // tk
        return (b, jnp.minimum(ki, last), 0)

    attn = pl.pallas_call(
        kernel,
        out_shape=jax.ShapeDtypeStruct((B, S_pad, Htot), dtype),
        grid=(B, nq, nk),
        in_specs=[
            pl.BlockSpec((1, tq, Htot), lambda b, qi, ki: (b, qi, 0)),
            pl.BlockSpec((1, tk, Htot), kv_index),
            pl.BlockSpec((1, tk, Htot), kv_index),
        ],
        out_specs=pl.BlockSpec((1, tq, Htot), lambda b, qi, ki: (b, qi, 0)),
        scratch_shapes=[
            pltpu.VMEM((tq, n_heads), jnp.float32),    # running max (per head)
            pltpu.VMEM((tq, n_heads), jnp.float32),    # running sum (per head)
            pltpu.VMEM((tq, Htot), jnp.float32),       # output accumulator
        ],
        compiler_params=pltpu.CompilerParams(
            dimension_semantics=("parallel", "parallel", "arbitrary"),
            vmem_limit_bytes=vmem_limit),
    )(q, k, v)

    # ---- output projection ----
    ts2, tn2, tkp2 = _proj_tiles(S_pad, Htot, D_out, itemsize, vmem_limit)
    out = pl.pallas_call(
        _proj_kernel,
        out_shape=jax.ShapeDtypeStruct((B, S_pad, D_out), dtype),
        grid=(B, S_pad // ts2, D_out // tn2, Htot // tkp2),
        in_specs=[
            pl.BlockSpec((1, ts2, tkp2), lambda b, si, ni, kp: (b, si, kp)),
            pl.BlockSpec((tkp2, tn2), lambda b, si, ni, kp: (kp, ni)),
        ],
        out_specs=pl.BlockSpec((1, ts2, tn2), lambda b, si, ni, kp: (b, si, ni)),
        scratch_shapes=[pltpu.VMEM((ts2, tn2), jnp.float32)],
        compiler_params=pltpu.CompilerParams(
            dimension_semantics=("parallel", "parallel", "parallel", "arbitrary"),
            vmem_limit_bytes=vmem_limit),
    )(attn, wo_t)

    if S_pad != S:
        out = out[:, :S]
    # TODO(synk): attn_dropout / proj_dropout omitted (identity in eval / p=0).
    # TODO(synk): rbf / linear attention-score variants not implemented (the
    #             default config uses the softmax path implemented here).
    return out


# ---------------------------------------------------------------------------
# Pure-JAX reference mirroring the PyTorch forward (eval mode, softmax attn)
# ---------------------------------------------------------------------------
def attention_reference(x, wq, wk, wv, wo, *, n_heads):
    B, S, D = x.shape
    Htot = wq.shape[0]
    d_attn = Htot // n_heads
    scale = 1.0 / math.sqrt(d_attn)
    q = (x @ wq.T).reshape(B, S, n_heads, d_attn).transpose(0, 2, 1, 3)
    k = (x @ wk.T).reshape(B, S, n_heads, d_attn).transpose(0, 2, 1, 3)
    v = (x @ wv.T).reshape(B, S, n_heads, d_attn).transpose(0, 2, 1, 3)
    scores = jnp.einsum("bhqd,bhkd->bhqk", q, k) * scale
    causal = jnp.tril(jnp.ones((S, S), dtype=bool))
    scores = jnp.where(causal[None, None], scores, -jnp.inf)
    p = jax.nn.softmax(scores, axis=-1)
    out = jnp.einsum("bhqk,bhkd->bhqd", p, v)
    out = out.transpose(0, 2, 1, 3).reshape(B, S, Htot)
    return out @ wo.T


if __name__ == "__main__":
    # Small shapes consistent with the module: d_attn = d_embed // n_heads.
    B, S, d_embed, n_heads = 2, 8, 32, 4
    d_attn = d_embed // n_heads
    Htot = n_heads * d_attn

    key = jax.random.PRNGKey(0)
    kx, kq, kk, kv, ko = jax.random.split(key, 5)

    # Deterministic init mirroring nn.init.normal_(std=0.02); no biases.
    x = jax.random.normal(kx, (B, S, d_embed), dtype=jnp.float32)
    wq = 0.02 * jax.random.normal(kq, (Htot, d_embed), dtype=jnp.float32)
    wk = 0.02 * jax.random.normal(kk, (Htot, d_embed), dtype=jnp.float32)
    wv = 0.02 * jax.random.normal(kv, (Htot, d_embed), dtype=jnp.float32)
    wo = 0.02 * jax.random.normal(ko, (d_embed, Htot), dtype=jnp.float32)

    ref = attention_reference(x, wq, wk, wv, wo, n_heads=n_heads)

    # --- f32 run: tight parity against the reference ---
    params_f32 = prepare_attention_params(wq, wk, wv, wo, n_heads=n_heads)
    out = attention_forward(x, *params_f32, n_heads=n_heads)
    out = jax.block_until_ready(out)
    assert out.shape == (B, S, d_embed)
    assert jnp.allclose(out, ref, atol=1e-4, rtol=1e-3), "f32 mismatch vs reference"

    # --- bf16 compute run (MXU-rate path); softmax/accumulation stay f32 ---
    params_bf16 = prepare_attention_params(wq, wk, wv, wo, n_heads=n_heads,
                                           dtype=jnp.bfloat16)
    out_bf16 = attention_forward(x, *params_bf16, n_heads=n_heads)
    out_bf16 = jax.block_until_ready(out_bf16)
    assert out_bf16.shape == (B, S, d_embed)
    assert jnp.allclose(out_bf16.astype(jnp.float32), ref, atol=5e-3, rtol=5e-2), \
        "bf16 mismatch vs reference"

    print("KERNEL_OK")
</pallas_src>

<mosaic_0001>
module attributes {stable_mosaic.version = 11 : i64} {
  func.func @_qkv_proj_kernel(%arg0: i32, %arg1: i32, %arg2: i32, %arg3: i32, %arg4: memref<1x8x32xf32, #tpu.memory_space<vmem>>, %arg5: memref<32x32xf32, #tpu.memory_space<vmem>>, %arg6: memref<32x32xf32, #tpu.memory_space<vmem>>, %arg7: memref<32x32xf32, #tpu.memory_space<vmem>>, %arg8: memref<1x8x32xf32, #tpu.memory_space<vmem>>, %arg9: memref<1x8x32xf32, #tpu.memory_space<vmem>>, %arg10: memref<1x8x32xf32, #tpu.memory_space<vmem>>, %arg11: memref<8x32xf32, #tpu.memory_space<vmem>>, %arg12: memref<8x32xf32, #tpu.memory_space<vmem>>, %arg13: memref<8x32xf32, #tpu.memory_space<vmem>>) attributes {dimension_semantics = [#tpu.dimension_semantics<parallel>, #tpu.dimension_semantics<parallel>, #tpu.dimension_semantics<parallel>, #tpu.dimension_semantics<arbitrary>], iteration_bounds = array<i64: 2, 1, 1, 1>, scalar_prefetch = 0 : i64, scratch_operands = 3 : i64, tpu.core_type = #tpu.core_type<tc>, window_params = [{transform_indices = @transform_0, window_bounds = array<i64: 1, 8, 32>}, {transform_indices = @transform_1, window_bounds = array<i64: 32, 32>}, {transform_indices = @transform_2, window_bounds = array<i64: 32, 32>}, {transform_indices = @transform_3, window_bounds = array<i64: 32, 32>}, {transform_indices = @transform_4, window_bounds = array<i64: 1, 8, 32>}, {transform_indices = @transform_5, window_bounds = array<i64: 1, 8, 32>}, {transform_indices = @transform_6, window_bounds = array<i64: 1, 8, 32>}]} {
    %c0_i32 = arith.constant 0 : i32
    %0 = arith.cmpi eq, %arg3, %c0_i32 : i32
    %1 = arith.extui %0 : i1 to i32
    %c0_i32_0 = arith.constant 0 : i32
    %2 = arith.cmpi ne, %1, %c0_i32_0 : i32
    scf.if %2 {
      %cst_25 = arith.constant 0.000000e+00 : f32
      %23 = vector.broadcast %cst_25 : f32 to vector<8x32xf32>
      %c0_26 = arith.constant 0 : index
      %c0_27 = arith.constant 0 : index
      %24 = vector.load %arg11[%c0_26, %c0_27] : memref<8x32xf32, #tpu.memory_space<vmem>>, vector<8x32xf32>
      tpu.vector_store %arg11[%c0_26, %c0_27], %23 {strides = array<i32>} : memref<8x32xf32, #tpu.memory_space<vmem>>, vector<8x32xf32>,
      %cst_28 = arith.constant 0.000000e+00 : f32
      %25 = vector.broadcast %cst_28 : f32 to vector<8x32xf32>
      %c0_29 = arith.constant 0 : index
      %c0_30 = arith.constant 0 : index
      %26 = vector.load %arg12[%c0_29, %c0_30] : memref<8x32xf32, #tpu.memory_space<vmem>>, vector<8x32xf32>
      tpu.vector_store %arg12[%c0_29, %c0_30], %25 {strides = array<i32>} : memref<8x32xf32, #tpu.memory_space<vmem>>, vector<8x32xf32>,
      %cst_31 = arith.constant 0.000000e+00 : f32
      %27 = vector.broadcast %cst_31 : f32 to vector<8x32xf32>
      %c0_32 = arith.constant 0 : index
      %c0_33 = arith.constant 0 : index
      %28 = vector.load %arg13[%c0_32, %c0_33] : memref<8x32xf32, #tpu.memory_space<vmem>>, vector<8x32xf32>
      tpu.vector_store %arg13[%c0_32, %c0_33], %27 {strides = array<i32>} : memref<8x32xf32, #tpu.memory_space<vmem>>, vector<8x32xf32>,
    } else {
    }
    %c0 = arith.constant 0 : index
    %c0_1 = arith.constant 0 : index
    %c0_2 = arith.constant 0 : index
    %3 = vector.load %arg4[%c0, %c0_1, %c0_2] : memref<1x8x32xf32, #tpu.memory_space<vmem>>, vector<1x8x32xf32>
    %4 = vector.shape_cast %3 : vector<1x8x32xf32> to vector<8x32xf32>
    %c0_3 = arith.constant 0 : index
    %c0_4 = arith.constant 0 : index
    %5 = vector.load %arg11[%c0_3, %c0_4] : memref<8x32xf32, #tpu.memory_space<vmem>>, vector<8x32xf32>
    %c0_5 = arith.constant 0 : index
    %c0_6 = arith.constant 0 : index
    %6 = vector.load %arg5[%c0_5, %c0_6] : memref<32x32xf32, #tpu.memory_space<vmem>>, vector<32x32xf32>
    %cst = arith.constant dense<0.000000e+00> : vector<8x32xf32>
    %7 = tpu.matmul %4, %6, %cst {dimension_numbers = #tpu.dot_dimension_numbers<[1], [0], [0], [1], [0, 0, 1, 1], [], []>} : vector<8x32xf32>, vector<32x32xf32>, vector<8x32xf32> -> vector<8x32xf32>
    %8 = arith.addf %5, %7 : vector<8x32xf32>
    %c0_7 = arith.constant 0 : index
    %c0_8 = arith.constant 0 : index
    %9 = vector.load %arg11[%c0_7, %c0_8] : memref<8x32xf32, #tpu.memory_space<vmem>>, vector<8x32xf32>
    tpu.vector_store %arg11[%c0_7, %c0_8], %8 {strides = array<i32>} : memref<8x32xf32, #tpu.memory_space<vmem>>, vector<8x32xf32>,
    %c0_9 = arith.constant 0 : index
    %c0_10 = arith.constant 0 : index
    %10 = vector.load %arg12[%c0_9, %c0_10] : memref<8x32xf32, #tpu.memory_space<vmem>>, vector<8x32xf32>
    %c0_11 = arith.constant 0 : index
    %c0_12 = arith.constant 0 : index
    %11 = vector.load %arg6[%c0_11, %c0_12] : memref<32x32xf32, #tpu.memory_space<vmem>>, vector<32x32xf32>
    %cst_13 = arith.constant dense<0.000000e+00> : vector<8x32xf32>
    %12 = tpu.matmul %4, %11, %cst_13 {dimension_numbers = #tpu.dot_dimension_numbers<[1], [0], [0], [1], [0, 0, 1, 1], [], []>} : vector<8x32xf32>, vector<32x32xf32>, vector<8x32xf32> -> vector<8x32xf32>
    %13 = arith.addf %10, %12 : vector<8x32xf32>
    %c0_14 = arith.constant 0 : index
    %c0_15 = arith.constant 0 : index
    %14 = vector.load %arg12[%c0_14, %c0_15] : memref<8x32xf32, #tpu.memory_space<vmem>>, vector<8x32xf32>
    tpu.vector_store %arg12[%c0_14, %c0_15], %13 {strides = array<i32>} : memref<8x32xf32, #tpu.memory_space<vmem>>, vector<8x32xf32>,
    %c0_16 = arith.constant 0 : index
    %c0_17 = arith.constant 0 : index
    %15 = vector.load %arg13[%c0_16, %c0_17] : memref<8x32xf32, #tpu.memory_space<vmem>>, vector<8x32xf32>
    %c0_18 = arith.constant 0 : index
    %c0_19 = arith.constant 0 : index
    %16 = vector.load %arg7[%c0_18, %c0_19] : memref<32x32xf32, #tpu.memory_space<vmem>>, vector<32x32xf32>
    %cst_20 = arith.constant dense<0.000000e+00> : vector<8x32xf32>
    %17 = tpu.matmul %4, %16, %cst_20 {dimension_numbers = #tpu.dot_dimension_numbers<[1], [0], [0], [1], [0, 0, 1, 1], [], []>} : vector<8x32xf32>, vector<32x32xf32>, vector<8x32xf32> -> vector<8x32xf32>
    %18 = arith.addf %15, %17 : vector<8x32xf32>
    %c0_21 = arith.constant 0 : index
    %c0_22 = arith.constant 0 : index
    %19 = vector.load %arg13[%c0_21, %c0_22] : memref<8x32xf32, #tpu.memory_space<vmem>>, vector<8x32xf32>
    tpu.vector_store %arg13[%c0_21, %c0_22], %18 {strides = array<i32>} : memref<8x32xf32, #tpu.memory_space<vmem>>, vector<8x32xf32>,
    %c0_i32_23 = arith.constant 0 : i32
    %20 = arith.cmpi eq, %arg3, %c0_i32_23 : i32
    %21 = arith.extui %20 : i1 to i32
    %c0_i32_24 = arith.constant 0 : i32
    %22 = arith.cmpi ne, %21, %c0_i32_24 : i32
    scf.if %22 {
      %c0_25 = arith.constant 0 : index
      %c0_26 = arith.constant 0 : index
      %23 = vector.load %arg11[%c0_25, %c0_26] : memref<8x32xf32, #tpu.memory_space<vmem>>, vector<8x32xf32>
      %c0_27 = arith.constant 0 : index
      %c0_28 = arith.constant 0 : index
      %c0_29 = arith.constant 0 : index
      %24 = vector.load %arg8[%c0_27, %c0_28, %c0_29] : memref<1x8x32xf32, #tpu.memory_space<vmem>>, vector<1x8x32xf32>
      %25 = vector.shape_cast %24 : vector<1x8x32xf32> to vector<8x32xf32>
      %26 = vector.shape_cast %23 : vector<8x32xf32> to vector<1x8x32xf32>
      tpu.vector_store %arg8[%c0_27, %c0_28, %c0_29], %26 {strides = array<i32>} : memref<1x8x32xf32, #tpu.memory_space<vmem>>, vector<1x8x32xf32>,
      %c0_30 = arith.constant 0 : index
      %c0_31 = arith.constant 0 : index
      %27 = vector.load %arg12[%c0_30, %c0_31] : memref<8x32xf32, #tpu.memory_space<vmem>>, vector<8x32xf32>
      %c0_32 = arith.constant 0 : index
      %c0_33 = arith.constant 0 : index
      %c0_34 = arith.constant 0 : index
      %28 = vector.load %arg9[%c0_32, %c0_33, %c0_34] : memref<1x8x32xf32, #tpu.memory_space<vmem>>, vector<1x8x32xf32>
      %29 = vector.shape_cast %28 : vector<1x8x32xf32> to vector<8x32xf32>
      %30 = vector.shape_cast %27 : vector<8x32xf32> to vector<1x8x32xf32>
      tpu.vector_store %arg9[%c0_32, %c0_33, %c0_34], %30 {strides = array<i32>} : memref<1x8x32xf32, #tpu.memory_space<vmem>>, vector<1x8x32xf32>,
      %c0_35 = arith.constant 0 : index
      %c0_36 = arith.constant 0 : index
      %31 = vector.load %arg13[%c0_35, %c0_36] : memref<8x32xf32, #tpu.memory_space<vmem>>, vector<8x32xf32>
      %c0_37 = arith.constant 0 : index
      %c0_38 = arith.constant 0 : index
      %c0_39 = arith.constant 0 : index
      %32 = vector.load %arg10[%c0_37, %c0_38, %c0_39] : memref<1x8x32xf32, #tpu.memory_space<vmem>>, vector<1x8x32xf32>
      %33 = vector.shape_cast %32 : vector<1x8x32xf32> to vector<8x32xf32>
      %34 = vector.shape_cast %31 : vector<8x32xf32> to vector<1x8x32xf32>
      tpu.vector_store %arg10[%c0_37, %c0_38, %c0_39], %34 {strides = array<i32>} : memref<1x8x32xf32, #tpu.memory_space<vmem>>, vector<1x8x32xf32>,
    } else {
    }
    return
  }
  func.func @transform_0(%arg0: i32, %arg1: i32, %arg2: i32, %arg3: i32) -> (i32, i32, i32) {
    %c0_i32 = arith.constant 0 : i32
    return %arg0, %arg1, %arg3 : i32, i32, i32
  }
  func.func @transform_1(%arg0: i32, %arg1: i32, %arg2: i32, %arg3: i32) -> (i32, i32) {
    %c0_i32 = arith.constant 0 : i32
    return %arg3, %arg2 : i32, i32
  }
  func.func @transform_2(%arg0: i32, %arg1: i32, %arg2: i32, %arg3: i32) -> (i32, i32) {
    %c0_i32 = arith.constant 0 : i32
    return %arg3, %arg2 : i32, i32
  }
  func.func @transform_3(%arg0: i32, %arg1: i32, %arg2: i32, %arg3: i32) -> (i32, i32) {
    %c0_i32 = arith.constant 0 : i32
    return %arg3, %arg2 : i32, i32
  }
  func.func @transform_4(%arg0: i32, %arg1: i32, %arg2: i32, %arg3: i32) -> (i32, i32, i32) {
    %c0_i32 = arith.constant 0 : i32
    return %arg0, %arg1, %arg2 : i32, i32, i32
  }
  func.func @transform_5(%arg0: i32, %arg1: i32, %arg2: i32, %arg3: i32) -> (i32, i32, i32) {
    %c0_i32 = arith.constant 0 : i32
    return %arg0, %arg1, %arg2 : i32, i32, i32
  }
  func.func @transform_6(%arg0: i32, %arg1: i32, %arg2: i32, %arg3: i32) -> (i32, i32, i32) {
    %c0_i32 = arith.constant 0 : i32
    return %arg0, %arg1, %arg2 : i32, i32, i32
  }
}

</mosaic_0001>

<bundles_post_ra>
// kernel: tpu_custom_call.1
= control target key start
LH: loop header
LB: loop body
LE: loop exit
PB: predicated region body
PF: predicated region fallthrough
CT: control target
= control target key end

     0   :  { %12 = vsyncpa [#allocation6], 0  ;;  %s1802_s0 = inlined_call_operand.hbm [shape: f32[2,8,32], index: 0, kind: input, shape index: {}]   ;;  %s1803_s1 = inlined_call_operand.hbm [shape: f32[32,32], index: 1, kind: input, shape index: {}]   ;;  %s1804_s2 = inlined_call_operand.hbm [shape: f32[32,32], index: 2, kind: input, shape index: {}]   ;;  %s1805_s3 = inlined_call_operand.hbm [shape: f32[32,32], index: 3, kind: input, shape index: {}]   ;;  %s1806_s4 = inlined_call_operand.hbm [shape: f32[2,8,32], index: 4, kind: output, shape index: {0}]   ;;  %s1807_s5 = inlined_call_operand.hbm [shape: f32[2,8,32], index: 5, kind: output, shape index: {1}]   ;;  %s1808_s6 = inlined_call_operand.hbm [shape: f32[2,8,32], index: 6, kind: output, shape index: {2}]  }
   0x1   :  { %14 = vsyncpa [#allocation6 + $0x1], 0 }
   0x2   :  { %15 = vsyncpa [#allocation9], 0 }
   0x3   :  { %16 = vsyncpa [#allocation12], 0 }
   0x4   :  { %17 = vsyncpa [#allocation7], 0 }
   0x5   :  { %19 = vsyncpa [#allocation7 + $0x1], 0 }
   0x6   :  { %20 = vsyncpa [#allocation15], 0 }
   0x7   :  { %22 = vsyncpa [#allocation15 + $0x1], 0  ;;  %s1427_s21 = smov 0   ;;  %s1429_s22 = smov 0  }
   0x8   :  { %s1431_s23 = smov 0   ;;  %s1433_s24 = smov 0  }
   0x9   :  { %s1435_s25 = smov 0   ;;  %s1437_s26 = smov 0  }
   0xa LB: > { %1815 = sst [smem:[#allocation22_spill]] %s1358_s21  ;;  %s1458_s27 = sadd.s32 4294967295, %s1378_s26   ;;  %s1378_s26 = sphi %s1437_s26, %s28_s26   ;;  %s1374_s25 = sphi %s1435_s25, %s1840_s25   ;;  %s1370_s24 = sphi %s1433_s24, %s1839_s24   ;;  %s1366_s23 = sphi %s1431_s23, %s1838_s23   ;;  %s1362_s22 = sphi %s1429_s22, %s1837_s22   ;;  %s1358_s21 = sphi %s1427_s21, %s1836_s21  }
   0xb   : > { %s1810_s28 = sadd.s32 4294967294, %s1378_s26   ;;  %p78_p0 = scmp.ne.s32.totalorder %s1362_s22, %s1358_s21 }
   0xc   : > { %p1809_p1 = scmp.eq.s32.totalorder %s1458_s27, 0  ;;  %p196_p3 = scmp.eq.s32.totalorder %s1810_s28, 1 }
   0xd   : > { %p914_p5 = scmp.ge.s32.totalorder %s1378_s26, 1  ;;  %p263_p7 = scmp.lt.s32.totalorder %s1378_s26, 3 }
   0xe   : > { %p1469_p4 = por %p1809_p1, %p78_p0  ;;  %p1474_p6 = por %p196_p3, %p78_p0 }
   0xf   : > { %p1479_p8 = pnand %p914_p5, %p263_p7  ;;  %s1380_s8 = smov [#allocation8]  }
  0x10   : > { %s1816_s29 = scalar_select %p1469_p4, 1, 0 }
  0x11   : > { %s1817_s30 = scalar_select %p1474_p6, 1, 0 }
  0x12   : > { %s1819_s7 = scalar_select %p1479_p8, 1, 0 }
  0x13   : > { %1818 = sst [smem:[#allocation23_spill]] %s1817_s30  ;;  %s279_s9 = sshll.u32 %s1380_s8, 4  ;;  %s1483_s9 = int_to_ptr.vmem [resolvable:$true] %s279_s9 }
  0x14   : > { %p1026_p9 = pneg %p1479_p8  ;;  %s1381_s11 = smov [#allocation10]  }
  0x15   : > { %s296_s12 = sshll.u32 %s1381_s11, 4  ;;  %s1382_s13 = smov [#allocation11]   ;;  %s1494_s12 = int_to_ptr.vmem [resolvable:$true] %s296_s12 }
  0x16   : > { %p1490_p11 = pnand %p1026_p9, %p1809_p1  ;;  %s1496_s14 = sshll.u32 %s1382_s13, 4  ;;  %s314_s14 = int_to_ptr.vmem [resolvable:$true] %s1496_s14 }
  0x17   : > { %s1114_s17 = scalar_lea.hbm %s1803_s1, 512 }
  0x18   : > { %p1115_p12 = scmp.ne.s32.totalorder %s1803_s1, %s1114_s17  ;;  %p1506_p13 = pneg %p1490_p11 }
  0x19   : > { %p1121_p5 = scmp.lt.u32.totalorder %s1114_s17, %s1803_s1 }
  0x1a   : > { %p1117_p0 = pnand %p1506_p13, %p1115_p12 }
  0x1c   : > { %p1118_p3 = pneg %p1117_p0 }
  0x1e   : > { %p1123_p7 = pnand %p1121_p5, %p1118_p3 }
  0x20   : > { %1126 = shalt.err (!%p1123_p7)
}
  0x21   : > { %s1127_s13 = scalar_lea.vmem %s1483_s9, 512  ;;  %p1135_p2 = scmp.lt.s32.totalorder %s1483_s9, %s1483_s9 }
  0x22   : > { %p1128_p9 = scmp.ne.s32.totalorder %s1483_s9, %s1127_s13  ;;  %p1136_p6 = scmp.lt.s32.totalorder %s1127_s13, %s1127_s13 }
  0x24   : > { %p1130_p10 = pnand %p1128_p9, %p1506_p13  ;;  %p1137_p12 = por %p1136_p6, %p1135_p2 }
  0x26   : > { %p1131_p1 = pneg %p1130_p10 }
  0x28   : > { %p1138_p0 = pnand %p1137_p12, %p1131_p1 }
  0x2a   : > { %1141 = shalt.err (!%p1138_p0)
}
  0x2b   : > { %s1383_s15 = smov 128   ;;  %s1384_s16 = smov 8  }
  0x2c   : > { %1029 = dma.hbm_to_vmem [thread:$0]  (!%p1490_p11), %s1803_s1, 512, %s1483_s9, [#allocation9], %s1383_s15, %s1383_s15, %s1384_s16  }
  0x2d   : > { %s1142_s11 = scalar_lea.hbm %s1804_s2, 512 }
  0x2e   : > { %p1143_p1 = scmp.ne.s32.totalorder %s1804_s2, %s1142_s11  ;;  %p1149_p10 = scmp.lt.u32.totalorder %s1142_s11, %s1804_s2 }
  0x30   : > { %p1145_p2 = pnand %p1143_p1, %p1506_p13 }
  0x32   : > { %p1146_p6 = pneg %p1145_p2 }
  0x34   : > { %p1151_p3 = pnand %p1149_p10, %p1146_p6 }
  0x36   : > { %1154 = shalt.err (!%p1151_p3)
}
  0x37   : > { %s1155_s9 = scalar_lea.vmem %s1494_s12, 512  ;;  %p1163_p12 = scmp.lt.s32.totalorder %s1494_s12, %s1494_s12 }
  0x38   : > { %p1156_p5 = scmp.ne.s32.totalorder %s1494_s12, %s1155_s9  ;;  %p1164_p0 = scmp.lt.s32.totalorder %s1155_s9, %s1155_s9 }
  0x3a   : > { %p1158_p7 = pnand %p1156_p5, %p1506_p13  ;;  %p1165_p1 = por %p1164_p0, %p1163_p12 }
  0x3c   : > { %p1159_p9 = pneg %p1158_p7 }
  0x3e   : > { %p1166_p2 = pnand %p1165_p1, %p1159_p9 }
  0x40   : > { %1169 = shalt.err (!%p1166_p2)
}
  0x41   : > { %1032 = dma.hbm_to_vmem [thread:$0]  (!%p1490_p11), %s1804_s2, 512, %s1494_s12, [#allocation9], %s1383_s15, %s1383_s15, %s1384_s16  }
  0x42   : > { %s1170_s18 = scalar_lea.hbm %s1805_s3, 512 }
  0x43   : > { %p1171_p6 = scmp.ne.s32.totalorder %s1805_s3, %s1170_s18  ;;  %p1177_p5 = scmp.lt.u32.totalorder %s1170_s18, %s1805_s3 }
  0x45   : > { %p1173_p10 = pnand %p1171_p6, %p1506_p13 }
  0x47   : > { %p1174_p3 = pneg %p1173_p10 }
  0x49   : > { %p1179_p7 = pnand %p1177_p5, %p1174_p3 }
  0x4b   : > { %1182 = shalt.err (!%p1179_p7)
}
  0x4c   : > { %s1183_s9 = scalar_lea.vmem %s314_s14, 512  ;;  %p1191_p1 = scmp.lt.s32.totalorder %s314_s14, %s314_s14 }
  0x4d   : > { %p1184_p9 = scmp.ne.s32.totalorder %s314_s14, %s1183_s9  ;;  %p1192_p2 = scmp.lt.s32.totalorder %s1183_s9, %s1183_s9 }
  0x4f   : > { %p1186_p12 = pnand %p1184_p9, %p1506_p13  ;;  %p1193_p4 = por %p1192_p2, %p1191_p1 }
  0x51   : > { %p1187_p0 = pneg %p1186_p12 }
  0x53   : > { %p1194_p8 = pnand %p1193_p4, %p1187_p0 }
  0x55   : > { %1197 = shalt.err (!%p1194_p8)
}
  0x56   : > { %1035 = dma.hbm_to_vmem [thread:$0]  (!%p1490_p11), %s1805_s3, 512, %s314_s14, [#allocation12], %s1383_s15, %s1383_s15, %s1384_s16  }
  0x57   : > { %s65_s20 = sadd.s32 1, %s1366_s23  ;;  %s54_s10 = sadd.s32 1, %s1374_s25 }
  0x58   : > { %p72_p4 = scmp.ne.s32.totalorder %s1366_s23, %s1362_s22  ;;  %p56_p8 = scmp.ge.s32.totalorder %s54_s10, 2 }
  0x59   : > { %p73_p13 = scmp.eq.s32.totalorder %s1378_s26, 0  ;;  %p1822_p6 = scmp.eq.s32.totalorder %s1458_s27, 1 }
  0x5a   : > { %p1053_p3 = scmp.lt.s32.totalorder %s1378_s26, 2  ;;  %s1842_s10 = smov (%p56_p8, %s54_s10), 0 }
  0x5b   : > { %p1585_p10 = por %p1822_p6, %p72_p4  ;;  %p74_p5 = por %p73_p13, %p72_p4 }
  0x5c   : > { %s327_s30 = sand.u32 1, %s1366_s23   ;;  %s58_s17 = ssub.s32 %s1374_s25, %s1842_s10 }
  0x5d   : > { %p63_p7 = scmp.eq.s32.totalorder %s58_s17, 0  ;;  %s919_s14 = sshll.u32 %s327_s30, 3 }
  0x5e   : > { %s920_s15 = sshll.u32 %s1374_s25, 7  ;;  %s331_s11 = scalar_lea.vmem [#allocation5], %s919_s14 }
  0x5f   : > { %s1597_s16 = scalar_select %p63_p7, %s1366_s23, %s65_s20  }
  0x60   : > { %s1602_s8 = scalar_lea.hbm %s1802_s0, %s920_s15  ;;  %s340_s13 = sshll.u32 %s331_s11, 4  ;;  %s1604_s13 = int_to_ptr.vmem [resolvable:$true] %s340_s13 }
  0x61   : > { %p1608_p11 = pnand %p1053_p3, %p74_p5  ;;  %s328_s12 = scalar_lea.sflag [#allocation6], %s327_s30 }
  0x62   : > { %s1198_s21 = scalar_lea.hbm %s1602_s8, 128  ;;  %s1203_s14 = scalar_lea.hbm %s1802_s0, 256 }
  0x63   : > { %p1199_p9 = scmp.ne.s32.totalorder %s1602_s8, %s1198_s21  ;;  %p1200_p12 = pneg %p1608_p11 }
  0x64   : > { %p1204_p2 = scmp.lt.u32.totalorder %s1602_s8, %s1802_s0  ;;  %p1205_p4 = scmp.lt.u32.totalorder %s1203_s14, %s1198_s21 }
  0x65   : > { %p1201_p0 = pnand %p1200_p12, %p1199_p9  ;;  %p1207_p13 = scmp.lt.u32.totalorder %s1198_s21, %s1602_s8 }
  0x66   : > { %p1206_p8 = por %p1205_p4, %p1204_p2 }
  0x67   : > { %p1202_p1 = pneg %p1201_p0 }
  0x68   : > { %p1208_p6 = por %p1207_p13, %p1206_p8 }
  0x6a   : > { %p1209_p3 = pnand %p1208_p6, %p1202_p1 }
  0x6c   : > { %1212 = shalt.err (!%p1209_p3)
}
  0x6d   : > { %s1213_s30 = scalar_lea.vmem %s1604_s13, 128  ;;  %s1385_s19 = smov [#allocation5]  }
  0x6e   : > { %p1214_p5 = scmp.ne.s32.totalorder %s1604_s13, %s1213_s30  ;;  %s1218_s11 = sshll.u32 %s1385_s19, 4  ;;  %s1219_s11 = int_to_ptr.vmem [resolvable:$false] %s1218_s11 }
  0x6f   : > { %s1220_s20 = scalar_lea.vmem %s1219_s11, 256  ;;  %p1221_p0 = scmp.lt.s32.totalorder %s1604_s13, %s1219_s11 }
  0x70   : > { %p1216_p7 = pnand %p1214_p5, %p1200_p12  ;;  %p1222_p2 = scmp.lt.s32.totalorder %s1220_s20, %s1213_s30 }
  0x72   : > { %p1217_p9 = pneg %p1216_p7  ;;  %p1223_p4 = por %p1222_p2, %p1221_p0 }
  0x74   : > { %p1224_p8 = pnand %p1223_p4, %p1217_p9 }
  0x76   : > { %1227 = shalt.err (!%p1224_p8)
}
  0x77   : > { %1039 = dma.hbm_to_vmem [thread:$0]  (!%p1608_p11), %s1602_s8, 128, %s1604_s13, %s328_s12  }
  0x78   : > { %p1825_p1 = scmp.ne.s32.totalorder %s1819_s7, 0 }
  0x79   : > { %s1640_s21 = sand.u32 (!%p1825_p1), 1, %s1362_s22   ;;  %p1826_p12 = scmp.ne.s32.totalorder (!%p1825_p1), %s1816_s29, 0 }
  0x7a   : > { %349 = sbr.rel (%p1825_p1) target bundleno = 431 (0x1af), region = 36  ;;  %s1643_s17 = sshll.u32 (!%p1825_p1), %s1640_s21, 3 }
  0x7b   : > { %s352_s14 = scalar_lea.sflag (!%p1825_p1), [#allocation6], %s1640_s21  ;;  %s355_s15 = scalar_lea.vmem (!%p1825_p1), [#allocation5], %s1643_s17 }
  0x81   : > { %1337 = dma.done.wait (%p1826_p12), %s352_s14, 128  }
  0x82   : > { %1339 = vsyncadd (%p1826_p12), %s352_s14, 4294967168  ;;  %p1827_p11 = scmp.eq.s32.totalorder %s1458_s27, 0 }
  0x84   : > { %1341 = dma.done.wait (%p1827_p11), [#allocation9], 1024   ;;  %p1828_p13 = pmov %p1827_p11 }
  0x85   : > { %p1829_p6 = pmov %p1827_p11 }
  0x86   : > { %1343 = vsyncadd (%p1828_p13), [#allocation9], 4294966272 }
  0x87   : > { %1345 = dma.done.wait (%p1829_p6), [#allocation12], 512   ;;  %p1830_p3 = pmov %p1829_p6 }
  0x88   : > { %vm413_vm0 = vcmask 261120   ;;  %v1386_v0 = vmov 0.0|0.0   ;;  %v1387_v1 = vmov 0.0   ;;  %vm1388_vm1 = vmmov 0   ;;  %v419_v2 = vld [vmem:[#allocation8] sm:$0xff]  ;;  %v420_v3 = vld [vmem:[#allocation8 + $0x8] sm:$0xff] }
  0x89   : > { %1347 = vsyncadd (%p1830_p3), [#allocation12], 4294966784  ;;  %988 = vmatprep.subr.bf16.mxu0 %v1386_v0  ;;  %994 = vmatprep.subr.bf16.mxu1 %v1386_v0  ;;  %414 = vst.msk [vmem:[#allocation2] sm:$0xff] %vm413_vm0, %v1387_v1  ;;  %v421_v4 = vld [vmem:[#allocation8 + $0x10] sm:$0xff]  ;;  %v989_v5 = vpack.c.bf16 %v420_v3, %v419_v2  ;;  %v422_v6 = vld [vmem:[#allocation8 + $0x18] sm:$0xff]  ;;  %s667_s29 = sand.u32 1, %s1458_s27  }
  0x8a   : > { %415 = vst.msk [vmem:[#allocation3] sm:$0xff] %vm413_vm0, %v1387_v1  ;;  %416 = vst.msk [vmem:[#allocation4] sm:$0xff] %vm413_vm0, %v1387_v1  ;;  %963 = vmatprep.mubr.msk.f32.mxu0 %vm1388_vm1, %v1387_v1  ;;  %974 = vmatprep.mubr.msk.f32.mxu1 %vm1388_vm1, %v1387_v1  ;;  %v500_v7 = vld [vmem:[#allocation10] sm:$0xff]  ;;  %v501_v8 = vld [vmem:[#allocation10 + $0x8] sm:$0xff]  ;;  %v992_v10 = vpack.c.bf16 %v422_v6, %v421_v4  ;;  %s1674_s7 = sshll.u32 %s1370_s24, 7  ;;  %s391_s8 = scalar_lea.vmem [#allocation13], %s1643_s17 }
  0x8b   : > { %v995_v9 = vpack.c.bf16 %v501_v8, %v500_v7  ;;  %990 = vmatpush3.bf16.msra.mxu0 %v989_v5  ;;  %v502_v11 = vld [vmem:[#allocation10 + $0x10] sm:$0xff]  ;;  %v503_v12 = vld [vmem:[#allocation10 + $0x18] sm:$0xff]  ;;  %v577_v13 = vld [vmem:[#allocation11] sm:$0xff]  ;;  %s688_s13 = sshll.u32 %s391_s8, 4  ;;  %s398_s9 = scalar_lea.vmem [#allocation14], %s1643_s17  ;;  %s1684_s13 = int_to_ptr.vmem [resolvable:$true] %s688_s13 }
  0x8c   : > { %991 = vmatprep.subr.bf16.mxu0 %v1386_v0  ;;  %v578_v14 = vld [vmem:[#allocation11 + $0x8] sm:$0xff]  ;;  %v998_v15 = vpack.c.bf16 %v503_v12, %v502_v11  ;;  %v417_v16 = vld [vmem:[%s355_s15] sm:$0xff]  ;;  %s703_s12 = sshll.u32 %s398_s9, 4  ;;  %s1682_s19 = scalar_lea.hbm %s1806_s4, %s1674_s7  ;;  %s1692_s12 = int_to_ptr.vmem [resolvable:$true] %s703_s12 }
  0x8d   : > { %996 = vmatpush3.bf16.msra.mxu1 %v995_v9  ;;  %v1001_v17 = vpack.c.bf16 %v578_v14, %v577_v13  ;;  %v579_v18 = vld [vmem:[#allocation11 + $0x10] sm:$0xff]  ;;  %v580_v19 = vld [vmem:[#allocation11 + $0x18] sm:$0xff]  ;;  %s1690_s20 = scalar_lea.hbm %s1807_s5, %s1674_s7  ;;  %s663_s14 = scalar_lea.sflag [#allocation7], %s1640_s21 }
  0x8e   : > { %997 = vmatprep.subr.bf16.mxu1 %v1386_v0  ;;  %v1004_v20 = vpack.c.bf16 %v580_v19, %v579_v18  ;;  %s1228_s15 = scalar_lea.vmem %s1684_s13, 128  ;;  %s1389_s18 = smov [#allocation13]  }
  0x8f   : > { %993 = vmatpush3.bf16.msra.mxu0 %v992_v10  ;;  %p1229_p5 = scmp.ne.s32.totalorder %s1684_s13, %s1228_s15  ;;  %s1232_s30 = sshll.u32 %s1389_s18, 4  ;;  %s1233_s30 = int_to_ptr.vmem [resolvable:$false] %s1232_s30 }
  0x90   : > { %1000 = vmatprep.subr.bf16.mxu0 %v1386_v0  ;;  %v418_v21 = vld [vmem:[#allocation2] sm:$0xff]  ;;  %s1234_s24 = scalar_lea.vmem %s1233_s30, 256  ;;  %p1235_p0 = scmp.lt.s32.totalorder %s1684_s13, %s1233_s30 }
  0x91   : > { %999 = vmatpush3.bf16.msra.mxu1 %v998_v15  ;;  %v499_v22 = vld [vmem:[#allocation3] sm:$0xff]  ;;  %v576_v29 = vld [vmem:[#allocation4] sm:$0xff]  ;;  %p1230_p7 = pnand %p1229_p5, %p1585_p10  ;;  %p1236_p2 = scmp.lt.s32.totalorder %s1234_s24, %s1228_s15 }
  0x92   : > { %964 = vmatmul.mubr.msk.f32.vlgmr.msra.gmra.mrb[0].mxu0 %vm413_vm0, %v417_v16 }
  0x93   : > { %1002 = vmatpush3.bf16.msra.mxu0 %v1001_v17  ;;  %985 = vmatprep.mubr.msk.f32.mxu0 %vm1388_vm1, %v1387_v1  ;;  %p1231_p9 = pneg %p1230_p7  ;;  %p1237_p4 = por %p1236_p2, %p1235_p0 }
  0x94   : > { %975 = vmatmul.mubr.msk.f32.vlgmr.msra.gmra.mrb[0].mxu1 %vm413_vm0, %v417_v16  ;;  %1003 = vmatprep.subr.bf16.mxu0 %v1386_v0 }
  0x95   : > { %p1238_p8 = pnand %p1237_p4, %p1231_p9 }
  0x97   : > { %1005 = vmatpush3.bf16.msra.mxu0 %v1004_v20 }
  0x9a   : > { %986 = vmatmul.mubr.msk.f32.vlgmr.msra.gmra.mrb[2].mxu0 %vm413_vm0, %v417_v16 }
 0x165   : > { %v493_v23 = vpop.f32.mrb[0].mxu0 }
 0x166   : > { %v497_v24 = vadd.f32 %v493_v23, %v418_v21  ;;  %v965_v25 = vpop.f32.mrb[1].mxu0 }
 0x167   : > { %v570_v26 = vpop.f32.mrb[0].mxu1 }
 0x168   : > { %v574_v27 = vadd.f32 %v570_v26, %v499_v22  ;;  %v976_v28 = vpop.f32.mrb[1].mxu1  ;;  %498 = vst.msk [vmem:[#allocation2] sm:$0xff] %vm413_vm0, %v497_v24 }
 0x16a   : > { %575 = vst.msk [vmem:[#allocation3] sm:$0xff] %vm413_vm0, %v574_v27 }
 0x16d   : > { %v647_v30 = vpop.f32.mrb[2].mxu0 }
 0x16e   : > { %v651_v31 = vadd.f32 %v647_v30, %v576_v29  ;;  %v987_v32 = vpop.f32.mrb[3].mxu0 }
 0x16f   : > { %v656_v33 = vld [vmem:[#allocation2] sm:$0xff] }
 0x170   : > { %652 = vst.msk [vmem:[#allocation4] sm:$0xff] %vm413_vm0, %v651_v31  ;;  %657 = vst.msk [vmem:[%s391_s8] sm:$0xff] %vm413_vm0, %v656_v33 }
 0x171   : > { %v658_v34 = vld [vmem:[#allocation3] sm:$0xff] }
 0x172   : > { %659 = vst.msk [vmem:[%s398_s9] sm:$0xff] %vm413_vm0, %v658_v34 }
 0x173   : > { %1241 = shalt.err (!%p1238_p8)
}
 0x174   : > { %s1242_s21 = scalar_lea.hbm %s1682_s19, 128  ;;  %s1246_s11 = scalar_lea.hbm %s1806_s4, 256 }
 0x175   : > { %p1243_p1 = scmp.ne.s32.totalorder %s1682_s19, %s1242_s21  ;;  %p1247_p13 = scmp.lt.u32.totalorder %s1682_s19, %s1806_s4 }
 0x176   : > { %p1248_p6 = scmp.lt.u32.totalorder %s1246_s11, %s1242_s21  ;;  %p1250_p5 = scmp.lt.u32.totalorder %s1242_s21, %s1682_s19 }
 0x177   : > { %p1244_p12 = pnand %p1243_p1, %p1585_p10 }
 0x178   : > { %p1249_p3 = por %p1248_p6, %p1247_p13 }
 0x179   : > { %p1245_p11 = pneg %p1244_p12 }
 0x17a   : > { %p1251_p7 = por %p1250_p5, %p1249_p3 }
 0x17c   : > { %p1252_p9 = pnand %p1251_p7, %p1245_p11 }
 0x17e   : > { %1255 = shalt.err (!%p1252_p9)
}
 0x17f   : > { %1020 = dma.vmem_to_hbm [thread:$0]  (%p1585_p10), %s1684_s13, 128, %s1682_s19, %s663_s14  }
 0x180   : > { %s1721_s15 = scalar_lea.sflag [#allocation15], %s667_s29  ;;  %s1256_s24 = scalar_lea.vmem %s1692_s12, 128 }
 0x181   : > { %p1257_p0 = scmp.ne.s32.totalorder %s1692_s12, %s1256_s24  ;;  %s1390_s21 = smov [#allocation14]  }
 0x182   : > { %s1260_s8 = sshll.u32 %s1390_s21, 4  ;;  %s1261_s8 = int_to_ptr.vmem [resolvable:$false] %s1260_s8 }
 0x183   : > { %p1258_p2 = pnand %p1257_p0, %p1585_p10  ;;  %s1262_s9 = scalar_lea.vmem %s1261_s8, 256 }
 0x184   : > { %p1263_p8 = scmp.lt.s32.totalorder %s1692_s12, %s1261_s8  ;;  %p1264_p1 = scmp.lt.s32.totalorder %s1262_s9, %s1256_s24 }
 0x185   : > { %p1259_p4 = pneg %p1258_p2 }
 0x186   : > { %p1265_p12 = por %p1264_p1, %p1263_p8 }
 0x188   : > { %p1266_p11 = pnand %p1265_p12, %p1259_p4 }
 0x18a   : > { %1269 = shalt.err (!%p1266_p11)
}
 0x18b   : > { %s1270_s27 = scalar_lea.hbm %s1690_s20, 128  ;;  %s1274_s19 = scalar_lea.hbm %s1807_s5, 256 }
 0x18c   : > { %p1271_p13 = scmp.ne.s32.totalorder %s1690_s20, %s1270_s27  ;;  %p1275_p5 = scmp.lt.u32.totalorder %s1690_s20, %s1807_s5 }
 0x18d   : > { %p1276_p7 = scmp.lt.u32.totalorder %s1274_s19, %s1270_s27  ;;  %p1278_p0 = scmp.lt.u32.totalorder %s1270_s27, %s1690_s20 }
 0x18e   : > { %p1272_p6 = pnand %p1271_p13, %p1585_p10 }
 0x18f   : > { %p1277_p9 = por %p1276_p7, %p1275_p5 }
 0x190   : > { %p1273_p3 = pneg %p1272_p6 }
 0x191   : > { %p1279_p2 = por %p1278_p0, %p1277_p9 }
 0x193   : > { %p1280_p4 = pnand %p1279_p2, %p1273_p3 }
 0x195   : > { %1283 = shalt.err (!%p1280_p4)
}
 0x196   : > { %1021 = dma.vmem_to_hbm [thread:$0]  (%p1585_p10), %s1692_s12, 128, %s1690_s20, %s1721_s15   ;;  %v660_v35 = vld [vmem:[#allocation4] sm:$0xff] }
 0x197   : > { %s405_s18 = scalar_lea.vmem [#allocation16], %s1643_s17  ;;  %s1750_s8 = scalar_lea.hbm %s1808_s6, %s1674_s7 }
 0x198   : > { %s718_s30 = sshll.u32 %s405_s18, 4  ;;  %661 = vst.msk [vmem:[%s405_s18] sm:$0xff] %vm413_vm0, %v660_v35  ;;  %s1391_s17 = smov [#allocation16]   ;;  %s1752_s30 = int_to_ptr.vmem [resolvable:$true] %s718_s30 }
 0x199   : > { %s1284_s9 = scalar_lea.vmem %s1752_s30, 128  ;;  %s1288_s12 = sshll.u32 %s1391_s17, 4  ;;  %s1289_s12 = int_to_ptr.vmem [resolvable:$false] %s1288_s12 }
 0x19a   : > { %p1285_p8 = scmp.ne.s32.totalorder %s1752_s30, %s1284_s9  ;;  %s1290_s20 = scalar_lea.vmem %s1289_s12, 256 }
 0x19b   : > { %p1291_p11 = scmp.lt.s32.totalorder %s1752_s30, %s1289_s12  ;;  %p1292_p13 = scmp.lt.s32.totalorder %s1290_s20, %s1284_s9 }
 0x19c   : > { %p1286_p1 = pnand %p1285_p8, %p1585_p10 }
 0x19d   : > { %p1293_p6 = por %p1292_p13, %p1291_p11 }
 0x19e   : > { %p1287_p12 = pneg %p1286_p1 }
 0x1a0   : > { %p1294_p3 = pnand %p1293_p6, %p1287_p12 }
 0x1a2   : > { %1297 = shalt.err (!%p1294_p3)
}
 0x1a3   : > { %s1298_s7 = scalar_lea.hbm %s1750_s8, 128  ;;  %s1302_s13 = scalar_lea.hbm %s1808_s6, 256 }
 0x1a4   : > { %p1299_p5 = scmp.ne.s32.totalorder %s1750_s8, %s1298_s7  ;;  %p1303_p0 = scmp.lt.u32.totalorder %s1750_s8, %s1808_s6 }
 0x1a5   : > { %p1304_p2 = scmp.lt.u32.totalorder %s1302_s13, %s1298_s7  ;;  %p1306_p8 = scmp.lt.u32.totalorder %s1298_s7, %s1750_s8 }
 0x1a6   : > { %p1300_p7 = pnand %p1299_p5, %p1585_p10 }
 0x1a7   : > { %p1305_p4 = por %p1304_p2, %p1303_p0 }
 0x1a8   : > { %p1301_p9 = pneg %p1300_p7 }
 0x1a9   : > { %p1307_p1 = por %p1306_p8, %p1305_p4 }
 0x1ab   : > { %p1308_p12 = pnand %p1307_p1, %p1301_p9 }
 0x1ad   : > { %1311 = shalt.err (!%p1308_p12)
}
 0x1ae   : > { %1022 = dma.vmem_to_hbm [thread:$0]  (%p1585_p10), %s1752_s30, 128, %s1750_s8, %s1721_s15  }
 0x1af PF: > { %s1831_s11 = sld [smem:[#allocation22_spill]]  ;;  %s1832_s18 = sld [smem:[#allocation23_spill]] }
 0x1b0   : > { %p1834_p13 = scmp.ge.s32.totalorder %s1378_s26, 2 }
 0x1b5   : > { %s730_s24 = sand.u32 1, %s1831_s11   ;;  %p1833_p11 = scmp.ne.s32.totalorder %s1832_s18, 0 }
 0x1b6   : > { %s731_s21 = scalar_lea.sflag [#allocation7], %s730_s24 }
 0x1b7   : > { %p1041_p6 = pnand %p1834_p13, %p1833_p11 }
 0x1b9   : > { %1349 = dma.done.wait (!%p1041_p6), %s731_s21, 128  }
 0x1ba   : > { %1351 = vsyncadd (!%p1041_p6), %s731_s21, 4294967168  ;;  %s1835_s9 = sadd.s32 4294967294, %s1378_s26  }
 0x1bb   : > { %s739_s17 = sand.u32 1, %s1835_s9  }
 0x1bc   : > { %s740_s12 = scalar_lea.sflag [#allocation15], %s739_s17 }
 0x1bd   : > { %1353 = dma.done.wait (!%p1041_p6), %s740_s12, 256  }
 0x1be   : > { %1355 = vsyncadd (!%p1041_p6), %s740_s12, 4294967040  ;;  %s28_s26 = sadd.s32 1, %s1378_s26   ;;  %s1836_s21 = smov %s1362_s22 }
 0x1bf   : > { %p25_p10 = scmp.ge.s32.totalorder %s28_s26, 4   ;;  %s1837_s22 = smov %s1366_s23 }
 0x1c0   : > { %s1838_s23 = smov %s1597_s16  ;;  %s1839_s24 = smov %s1374_s25 }
 0x1c1   : > { %s1840_s25 = smov %s1842_s10  ;;  %27 = sbr.rel (!%p25_p10) target bundleno = 10 (0xa), region = 136 }
 0x1c8   :  { %754 = vsyncpa [#allocation6], 1 }
 0x1c9   :  { %756 = vsyncpa [#allocation6 + $0x1], 1 }
 0x1ca   :  { %757 = vsyncpa [#allocation9], 1 }
 0x1cb   :  { %758 = vsyncpa [#allocation12], 1 }
 0x1cc   :  { %759 = vsyncpa [#allocation7], 1 }
 0x1cd   :  { %761 = vsyncpa [#allocation7 + $0x1], 1 }
 0x1ce   :  { %762 = vsyncpa [#allocation15], 1 }
 0x1cf   :  { %764 = vsyncpa [#allocation15 + $0x1], 1 }

</bundles_post_ra>
